<compile_context>
chip_gen: v5e
topology: v5e:2x2
jax: 0.10.0
libtpu: 0.0.40
codegen_flags: <defaults>
</compile_context>

<pallas_src>
import numpy as np
import jax
import jax.numpy as jnp
from jax.experimental import pallas as pl
from jax.experimental.pallas import tpu as pltpu


def _round_up(x, m):
    return ((x + m - 1) // m) * m


def _adaptive_pool_matrix(size, offset, full, out_size):
    """Pooling matrix P (out_size, full): P @ (full-length axis) equals
    adaptive_avg_pool1d of the crop [offset, offset+size)."""
    P = np.zeros((out_size, full), dtype=np.float32)
    for i in range(out_size):
        start = (i * size) // out_size
        end = -((-(i + 1) * size) // out_size)  # ceil((i+1)*size/out_size)
        P[i, offset + start:offset + end] = 1.0 / float(end - start)
    return P


def _fused_cutout_kernel(starts_ref, a_ref, x_ref, b_ref, o_ref, t_ref):
    # starts_ref: (cutn,) int32 SMEM (scalar prefetch) 8-aligned crop-row start
    # a_ref: (1, S, Hc)   bf16  row-pool matrix (columns relative to starts[k])
    # x_ref: (1, H, W)    bf16  one image channel; invariant over inner k axis
    # b_ref: (1, W, S)    bf16  col-pool matrix, pre-transposed
    # o_ref: (1, 1, S, S) bf16  output block at (cutout k, channel c)
    # t_ref: (S, W)       f32   VMEM scratch (fused intermediate, never in HBM)
    k = pl.program_id(1)
    hc = a_ref.shape[2]
    start = pl.multiple_of(starts_ref[k], 8)
    x_win = x_ref[0, pl.ds(start, hc), :]                       # (Hc, W)
    t_ref[...] = jnp.dot(a_ref[0], x_win,
                         preferred_element_type=jnp.float32)    # (S, W) f32
    o = jnp.dot(t_ref[...].astype(b_ref.dtype), b_ref[0],
                preferred_element_type=jnp.float32)              # (S, S) f32
    o_ref[0, 0] = o.astype(o_ref.dtype)


def _vmem_limit_bytes(block_bytes, scratch_bytes):
    try:
        cap = int(pltpu.get_tpu_info().vmem_capacity_bytes)
    except Exception:
        cap = 64 * 1024 * 1024  # assume the smallest (v7x) if the query fails
    # double-buffered blocks + scratch + compiler headroom, clamped between a
    # safe floor and ~62% of physical VMEM (valid on v7x as well as v5e/v6e).
    need = 2 * block_bytes + scratch_bytes + (8 << 20)
    return int(min(max(need, 32 << 20), (cap * 5) // 8))


class MakeCutoutsPallas:
    def __init__(self, cut_size, cutn, cut_pow=1.0, out_dtype=jnp.bfloat16):
        self.cut_size = cut_size
        self.cutn = cutn
        self.cut_pow = cut_pow
        self.out_dtype = out_dtype

    def __call__(self, x, key):
        # x: (N, C, H, W) float32
        N, C, H, W = x.shape
        S, cutn = self.cut_size, self.cutn
        NC = N * C
        sideY, sideX = H, W
        max_size = min(sideX, sideY)
        min_size = min(sideX, sideY, S)

        # ---- host glue: ONE vectorized RNG draw -> one device->host sync ----
        # (Numerically this sync is unavoidable here since the crop geometry is
        #  data-dependent; in a training loop, pre-draw next step's randoms.)
        rnd = np.asarray(jax.random.uniform(key, (3, cutn)))

        sizes, oys, oxs, starts0, spans = [], [], [], [], []
        for k in range(cutn):
            size = int(rnd[0, k] ** self.cut_pow * (max_size - min_size) + min_size)
            ox = int(rnd[1, k] * (sideX - size + 1))
            oy = int(rnd[2, k] * (sideY - size + 1))
            sizes.append(size)
            oxs.append(ox)
            oys.append(oy)
            s0 = (oy // 8) * 8                 # sublane-aligned window start
            starts0.append(s0)
            spans.append(oy + size - s0)

        # Static (per-call) contraction length: crop rows only, 8-aligned.
        Hc = min(H, _round_up(max(spans), 8))
        starts = [min(s0, max(0, H - Hc)) for s0 in starts0]

        # Pool matrices, compacted to the Hc-row window, bf16 on the host
        # (halves the H2D transfer, removes on-device casts).
        A = np.zeros((cutn, S, Hc), dtype=np.float32)   # row pooling
        Bt = np.zeros((cutn, W, S), dtype=np.float32)   # col pooling, transposed
        for k in range(cutn):
            A[k] = _adaptive_pool_matrix(sizes[k], oys[k] - starts[k], Hc, S)
            Bt[k] = _adaptive_pool_matrix(sizes[k], oxs[k], W, S).T
        A_bf = jnp.asarray(A.astype(jnp.bfloat16))
        Bt_bf = jnp.asarray(Bt.astype(jnp.bfloat16))
        starts_dev = jnp.asarray(np.asarray(starts, dtype=np.int32))

        # X in natural layout; (N,C,H,W) -> (NC,H,W) is a free reshape.
        x_bf = x.reshape(NC, H, W).astype(jnp.bfloat16)

        out_dt = self.out_dtype
        out_elt = jnp.dtype(out_dt).itemsize
        block_bytes = 2 * (S * Hc + H * W + W * S) + out_elt * S * S
        scratch_bytes = 4 * S * W
        cparams = pltpu.CompilerParams(
            # Two independent (reduction-free) axes; both parallel so the v7x
            # megacore can split on either (NC and cutn are both >= 2 here).
            dimension_semantics=("parallel", "parallel"),
            vmem_limit_bytes=_vmem_limit_bytes(block_bytes, scratch_bytes),
        )
        cost = pl.CostEstimate(
            flops=int(2 * cutn * NC * S * Hc * W + 2 * cutn * NC * S * W * S),
            transcendentals=0,
            bytes_accessed=int(2 * (cutn * S * Hc + NC * H * W + cutn * W * S)
                               + out_elt * cutn * NC * S * S),
        )
        # TODO(synk): on v7x, single-buffer the inner-axis-invariant X block
        # (pipeline_mode=pl.Buffered(1)) and/or tile H/W with an extra grid
        # axis once per-channel blocks approach the 64 MiB VMEM budget.

        out = pl.pallas_call(
            _fused_cutout_kernel,
            out_shape=jax.ShapeDtypeStruct((cutn, NC, S, S), out_dt),
            grid_spec=pltpu.PrefetchScalarGridSpec(
                num_scalar_prefetch=1,              # starts -> SMEM
                grid=(NC, cutn),                    # channel outer, cutout inner
                in_specs=[
                    pl.BlockSpec((1, S, Hc), lambda c, k, st: (k, 0, 0)),
                    pl.BlockSpec((1, H, W), lambda c, k, st: (c, 0, 0)),
                    pl.BlockSpec((1, W, S), lambda c, k, st: (k, 0, 0)),
                ],
                out_specs=pl.BlockSpec((1, 1, S, S),
                                       lambda c, k, st: (k, c, 0, 0)),
                scratch_shapes=[pltpu.VMEM((S, W), jnp.float32)],
            ),
            compiler_params=cparams,
            cost_estimate=cost,
        )(starts_dev, A_bf, x_bf, Bt_bf)

        # (cutn, NC, S, S) -> (cutn*N, C, S, S): contiguous, free reshape;
        # row ordering matches torch.cat(cutouts).
        out = out.reshape(cutn * N, C, S, S)
        return out, (sizes, oys, oxs)


def _ref_crop_pool(x_np, size, oy, ox, out_size):
    """Reference: crop + adaptive_avg_pool2d semantics, plain numpy f32."""
    crop = x_np[:, :, oy:oy + size, ox:ox + size]
    N, C = x_np.shape[0], x_np.shape[1]
    out = np.zeros((N, C, out_size, out_size), dtype=np.float32)
    for i in range(out_size):
        ys = (i * size) // out_size
        ye = -((-(i + 1) * size) // out_size)
        for j in range(out_size):
            xs = (j * size) // out_size
            xe = -((-(j + 1) * size) // out_size)
            out[:, :, i, j] = crop[:, :, ys:ye, xs:xe].mean(axis=(2, 3))
    return out


if __name__ == "__main__":
    key = jax.random.PRNGKey(0)
    N, C, H, W = 2, 4, 16, 16
    cut_size, cutn = 8, 4

    x = jax.random.normal(jax.random.fold_in(key, 123), (N, C, H, W),
                          dtype=jnp.float32)

    mod = MakeCutoutsPallas(cut_size, cutn, cut_pow=1.0)
    out, (sizes, oys, oxs) = mod(x, key)
    out = jax.block_until_ready(out)
    assert out.shape == (cutn * N, C, cut_size, cut_size)

    # Reference: direct crop + adaptive average pool in float32.
    x_np = np.asarray(x)
    ref = np.concatenate(
        [_ref_crop_pool(x_np, sizes[k], oys[k], oxs[k], cut_size)
         for k in range(cutn)], axis=0)
    out_np = np.asarray(out).astype(np.float32)
    assert ref.shape == out_np.shape
    # bf16 inputs / bf16 output -> relative tolerance ~1e-2.
    assert np.allclose(out_np, ref, atol=5e-2, rtol=5e-2), \
        float(np.abs(out_np - ref).max())

    print("KERNEL_OK")
</pallas_src>

<mosaic_0001>
module attributes {stable_mosaic.version = 11 : i64} {
  func.func @_fused_cutout_kernel(%arg0: i32, %arg1: i32, %arg2: memref<4xi32, #tpu.memory_space<smem>>, %arg3: memref<1x8x16xbf16, #tpu.memory_space<vmem>>, %arg4: memref<1x16x16xbf16, #tpu.memory_space<vmem>>, %arg5: memref<1x16x8xbf16, #tpu.memory_space<vmem>>, %arg6: memref<1x1x8x8xbf16, #tpu.memory_space<vmem>>, %arg7: memref<8x16xf32, #tpu.memory_space<vmem>>) attributes {dimension_semantics = [#tpu.dimension_semantics<parallel>, #tpu.dimension_semantics<parallel>], iteration_bounds = array<i64: 8, 4>, scalar_prefetch = 1 : i64, scratch_operands = 1 : i64, tpu.core_type = #tpu.core_type<tc>, window_params = [{transform_indices = @transform_0, window_bounds = array<i64: 1, 8, 16>}, {transform_indices = @transform_1, window_bounds = array<i64: 1, 16, 16>}, {transform_indices = @transform_2, window_bounds = array<i64: 1, 16, 8>}, {transform_indices = @transform_3, window_bounds = array<i64: 1, 1, 8, 8>}]} {
    %0 = arith.index_cast %arg1 : i32 to index
    %1 = memref.load %arg2[%0] : memref<4xi32, #tpu.memory_space<smem>>
    %2 = tpu.assume_multiple %1, 8 : i32
    %c0 = arith.constant 0 : index
    %3 = arith.index_cast %2 : i32 to index
    %c0_0 = arith.constant 0 : index
    %4 = vector.load %arg4[%c0, %3, %c0_0] : memref<1x16x16xbf16, #tpu.memory_space<vmem>>, vector<1x16x16xbf16>
    %5 = vector.shape_cast %4 : vector<1x16x16xbf16> to vector<16x16xbf16>
    %c0_1 = arith.constant 0 : index
    %c0_2 = arith.constant 0 : index
    %c0_3 = arith.constant 0 : index
    %6 = vector.load %arg3[%c0_1, %c0_2, %c0_3] : memref<1x8x16xbf16, #tpu.memory_space<vmem>>, vector<1x8x16xbf16>
    %7 = vector.shape_cast %6 : vector<1x8x16xbf16> to vector<8x16xbf16>
    %cst = arith.constant dense<0.000000e+00> : vector<8x16xf32>
    %8 = tpu.matmul %7, %5, %cst {dimension_numbers = #tpu.dot_dimension_numbers<[1], [0], [0], [1], [0, 0, 1, 1], [], []>} : vector<8x16xbf16>, vector<16x16xbf16>, vector<8x16xf32> -> vector<8x16xf32>
    %c0_4 = arith.constant 0 : index
    %c0_5 = arith.constant 0 : index
    %9 = vector.load %arg7[%c0_4, %c0_5] : memref<8x16xf32, #tpu.memory_space<vmem>>, vector<8x16xf32>
    tpu.vector_store %arg7[%c0_4, %c0_5], %8 {strides = array<i32>} : memref<8x16xf32, #tpu.memory_space<vmem>>, vector<8x16xf32>,
    %c0_6 = arith.constant 0 : index
    %c0_7 = arith.constant 0 : index
    %10 = vector.load %arg7[%c0_6, %c0_7] : memref<8x16xf32, #tpu.memory_space<vmem>>, vector<8x16xf32>
    %11 = arith.truncf %10 : vector<8x16xf32> to vector<8x16xbf16>
    %c0_8 = arith.constant 0 : index
    %c0_9 = arith.constant 0 : index
    %c0_10 = arith.constant 0 : index
    %12 = vector.load %arg5[%c0_8, %c0_9, %c0_10] : memref<1x16x8xbf16, #tpu.memory_space<vmem>>, vector<1x16x8xbf16>
    %13 = vector.shape_cast %12 : vector<1x16x8xbf16> to vector<16x8xbf16>
    %cst_11 = arith.constant dense<0.000000e+00> : vector<8x8xf32>
    %14 = tpu.matmul %11, %13, %cst_11 {dimension_numbers = #tpu.dot_dimension_numbers<[1], [0], [0], [1], [0, 0, 1, 1], [], []>} : vector<8x16xbf16>, vector<16x8xbf16>, vector<8x8xf32> -> vector<8x8xf32>
    %15 = arith.truncf %14 : vector<8x8xf32> to vector<8x8xbf16>
    %c0_12 = arith.constant 0 : index
    %c0_13 = arith.constant 0 : index
    %c0_14 = arith.constant 0 : index
    %c0_15 = arith.constant 0 : index
    %16 = vector.load %arg6[%c0_12, %c0_13, %c0_14, %c0_15] : memref<1x1x8x8xbf16, #tpu.memory_space<vmem>>, vector<1x1x8x8xbf16>
    %17 = vector.shape_cast %16 : vector<1x1x8x8xbf16> to vector<8x8xbf16>
    %18 = vector.shape_cast %15 : vector<8x8xbf16> to vector<1x1x8x8xbf16>
    tpu.vector_store %arg6[%c0_12, %c0_13, %c0_14, %c0_15], %18 {strides = array<i32>} : memref<1x1x8x8xbf16, #tpu.memory_space<vmem>>, vector<1x1x8x8xbf16>,
    return
  }
  func.func @transform_0(%arg0: i32, %arg1: i32, %arg2: memref<4xi32, #tpu.memory_space<smem>>) -> (i32, i32, i32) {
    %c0_i32 = arith.constant 0 : i32
    %c0_i32_0 = arith.constant 0 : i32
    %c0_i32_1 = arith.constant 0 : i32
    return %arg1, %c0_i32, %c0_i32_0 : i32, i32, i32
  }
  func.func @transform_1(%arg0: i32, %arg1: i32, %arg2: memref<4xi32, #tpu.memory_space<smem>>) -> (i32, i32, i32) {
    %c0_i32 = arith.constant 0 : i32
    %c0_i32_0 = arith.constant 0 : i32
    %c0_i32_1 = arith.constant 0 : i32
    return %arg0, %c0_i32, %c0_i32_0 : i32, i32, i32
  }
  func.func @transform_2(%arg0: i32, %arg1: i32, %arg2: memref<4xi32, #tpu.memory_space<smem>>) -> (i32, i32, i32) {
    %c0_i32 = arith.constant 0 : i32
    %c0_i32_0 = arith.constant 0 : i32
    %c0_i32_1 = arith.constant 0 : i32
    return %arg1, %c0_i32, %c0_i32_0 : i32, i32, i32
  }
  func.func @transform_3(%arg0: i32, %arg1: i32, %arg2: memref<4xi32, #tpu.memory_space<smem>>) -> (i32, i32, i32, i32) {
    %c0_i32 = arith.constant 0 : i32
    %c0_i32_0 = arith.constant 0 : i32
    %c0_i32_1 = arith.constant 0 : i32
    return %arg1, %arg0, %c0_i32, %c0_i32_0 : i32, i32, i32, i32
  }
}

</mosaic_0001>

<bundles_post_ra>
// kernel: tpu_custom_call.1
= control target key start
LH: loop header
LB: loop body
LE: loop exit
PB: predicated region body
PF: predicated region fallthrough
CT: control target
= control target key end

     0   :  { %s746_s18 = smov [#allocation4]   ;;  %s952_s0 = inlined_call_operand.vmem [shape: s32[4], index: 0, kind: input, shape index: {}]   ;;  %s953_s1 = inlined_call_operand.vmem [shape: bf16[4,8,16], index: 1, kind: input, shape index: {}]   ;;  %s954_s2 = inlined_call_operand.hbm [shape: bf16[8,16,16], index: 2, kind: input, shape index: {}]   ;;  %s955_s3 = inlined_call_operand.vmem [shape: bf16[4,16,8], index: 3, kind: input, shape index: {}]   ;;  %s956_s4 = inlined_call_operand.hbm [shape: bf16[4,8,8,8], index: 4, kind: output, shape index: {}]  }
   0x1   :  { %s10_s17 = sshll.u32 %s952_s0, 4  ;;  %s11_s17 = int_to_ptr.vmem [resolvable:$true] %s10_s17 }
   0x2   :  { %13 = dma.vmem_to_smem %s11_s17, 16, %s746_s18, [#allocation3] }
   0x3   :  { %692 = dma.done.wait [#allocation3], 16 }
   0x4   :  { %693 = vsyncadd [#allocation3], 4294967280 }
   0x5   :  { %16 = sfence }
   0x6   :  { %17 = vsyncpa [#allocation6], 0 }
   0x7   :  { %19 = vsyncpa [#allocation6 + $0x1], 0 }
   0x8   :  { %20 = vsyncpa [#allocation7], 0 }
   0x9   :  { %22 = vsyncpa [#allocation7 + $0x1], 0  ;;  %s777_s19 = smov 0   ;;  %s779_s20 = smov 0  }
   0xa   :  { %s781_s21 = smov 0   ;;  %s783_s22 = smov 0  }
   0xb   :  { %s785_s23 = smov 0   ;;  %s787_s0 = smov 0  }
   0xc   :  { %s789_s24 = smov 0   ;;  %s791_s25 = smov 0  }
   0xd   :  { %s793_s26 = smov 0   ;;  %s795_s27 = smov 0  }
   0xe   :  { %s797_s28 = smov 0  }
   0xf LB: > { %961 = sst [smem:[#allocation12_spill]] %s736_s26  ;;  %s440_s29 = sadd.s32 4294967295, %s744_s28   ;;  %s744_s28 = sphi %s797_s28, %s28_s28   ;;  %s740_s27 = sphi %s795_s27, %s972_s27   ;;  %s736_s26 = sphi %s793_s26, %s971_s26   ;;  %s732_s25 = sphi %s791_s25, %s970_s25   ;;  %s728_s24 = sphi %s789_s24, %s969_s24   ;;  %s724_s0 = sphi %s787_s0, %s978_s0   ;;  %s720_s23 = sphi %s785_s23, %s977_s23   ;;  %s716_s22 = sphi %s783_s22, %s976_s22   ;;  %s712_s21 = sphi %s781_s21, %s975_s21   ;;  %s708_s20 = sphi %s779_s20, %s974_s20   ;;  %s704_s19 = sphi %s777_s19, %s973_s19  }
  0x10   : > { %962 = sst [smem:[#allocation13_spill]] %s740_s27  ;;  %s441_s30 = sadd.s32 4294967294, %s744_s28  }
  0x11   : > { %s37_s5 = sadd.s32 1, %s736_s26  ;;  %s40_s6 = sadd.s32 1, %s740_s27 }
  0x12   : > { %p38_p0 = scmp.ge.s32.totalorder %s37_s5, 4  ;;  %s73_s7 = sadd.s32 1, %s724_s0 }
  0x13   : > { %p80_p1 = scmp.ne.s32.totalorder %s724_s0, %s720_s23  ;;  %p81_p2 = scmp.eq.s32.totalorder %s744_s28, 0 }
  0x14   : > { %s980_s5 = smov (%p38_p0, %s37_s5), 0  ;;  %s982_s6 = smov (!%p38_p0, %s40_s6), %s740_s27 }
  0x15   : > { %963 = sst [smem:[#allocation14_spill]] %s980_s5  ;;  %p841_p3 = por %p81_p2, %p80_p1 }
  0x16   : > { %p86_p4 = scmp.ne.s32.totalorder %s720_s23, %s716_s22  ;;  %p42_p5 = scmp.ge.s32.totalorder %s982_s6, 8 }
  0x17   : > { %p87_p6 = scmp.eq.s32.totalorder %s440_s29, 0  ;;  %s122_s9 = ssub.s32 %s736_s26, %s980_s5 }
  0x18   : > { %s127_s10 = sadd.s32 1, %s712_s21  ;;  %s984_s6 = smov (%p42_p5, %s982_s6), 0 }
  0x19   : > { %965 = sst [smem:[#allocation15_spill]] %s984_s6  ;;  %p851_p7 = por %p87_p6, %p86_p4 }
  0x1a   : > { %p137_p8 = scmp.ne.s32.totalorder %s712_s21, %s708_s20  ;;  %s70_s12 = ssub.s32 %s740_s27, %s984_s6 }
  0x1b   : > { %p138_p9 = scmp.eq.s32.totalorder %s440_s29, 31  ;;  %p71_p10 = scmp.eq.s32.totalorder %s70_s12, 0 }
  0x1c   : > { %s124_s13 = sor.u32 %s122_s9, %s70_s12  ;;  %p143_p13 = scmp.ne.s32.totalorder %s708_s20, %s704_s19 }
  0x1d   : > { %p125_p11 = scmp.eq.s32.totalorder %s124_s13, 0  ;;  %p859_p12 = por %p138_p9, %p137_p8 }
  0x1e   : > { %s864_s15 = scalar_select %p71_p10, %s724_s0, %s73_s7  }
  0x1f   : > { %s867_s16 = scalar_select %p125_p11, %s712_s21, %s127_s10  }
  0x20   : > { %p144_p0 = scmp.eq.s32.totalorder %s441_s30, 31  ;;  %p485_p1 = scmp.lt.s32.totalorder %s744_s28, 32 }
  0x21   : > { %s171_s18 = sand.u32 1, %s724_s0   ;;  %s469_s29 = sshll.u32 %s740_s27, 3 }
  0x22   : > { %p872_p2 = por %p144_p0, %p143_p13  ;;  %s444_s22 = sshll.u32 %s171_s18, 3 }
  0x23   : > { %s180_s13 = scalar_lea.hbm %s954_s2, %s469_s29  ;;  %s175_s7 = scalar_lea.vmem [#allocation5], %s444_s22 }
  0x24   : > { %s183_s6 = sshll.u32 %s175_s7, 4  ;;  %s181_s5 = sshll.u32 %s180_s13, 4  ;;  %s184_s6 = int_to_ptr.vmem [resolvable:$true] %s183_s6  ;;  %s182_s5 = int_to_ptr.hbm [resolvable:$true] %s181_s5 }
  0x25   : > { %p478_p4 = pnand %p485_p1, %p841_p3  ;;  %p447_p5 = scmp.ge.s32.totalorder %s744_s28, 1 }
  0x26   : > { %s172_s30 = scalar_lea.sflag [#allocation6], %s171_s18  ;;  %s747_s10 = smov 64  }
  0x27   : > { %s748_s26 = smov 4   ;;  %p199_p6 = scmp.lt.s32.totalorder %s744_s28, 33 }
  0x28   : > { %480 = dma.hbm_to_vmem [thread:$0]  (!%p478_p4), %s182_s5, 128, %s184_s6, %s172_s30, %s747_s10, %s747_s10, %s748_s26  }
  0x29   : > { %p200_p8 = pnand %p447_p5, %p199_p6 }
  0x2a   : > { %s205_s27 = sand.u32 (!%p200_p8), 1, %s720_s23  }
  0x2b   : > { %203 = sbr.rel (%p200_p8) target bundleno = 332 (0x14c), region = 32  ;;  %s448_s9 = sshll.u32 (!%p200_p8), %s205_s27, 3 }
  0x2c   : > { %s206_s29 = scalar_lea.sflag (!%p200_p8), [#allocation6], %s205_s27  ;;  %s209_s22 = scalar_lea.vmem (!%p200_p8), [#allocation5], %s448_s9 }
  0x30   : > { %695 = dma.done.wait (%p851_p7), %s206_s29, 128  }
  0x31   : > { %697 = vsyncadd (%p851_p7), %s206_s29, 4294967168  ;;  %p242_p3 = scmp.lt.s32.totalorder %s728_s24, 3  ;;  %s252_s8 = sld [smem:[#allocation4 + %s728_s24]]  ;;  %vm266_vm0 = vcmask 130048   ;;  %vm311_vm1 = vcmask 60416  }
  0x32   : > { %s465_s29 = sshll.u32 %s728_s24, 3 }
  0x33   : > { %s243_s26 = scalar_select %p242_p3, %s728_s24, 3 }
  0x35   : > { %s450_s5 = sshll.u32 %s243_s26, 2  ;;  %s470_s11 = sshll.u32 %s243_s26, 3 }
  0x36   : > { %s245_s27 = scalar_lea.vmem %s953_s1, %s450_s5  ;;  %s250_s9 = scalar_lea.vmem %s955_s3, %s470_s11 }
  0x37   : > { %s253_s6 = sshra.s32 %s252_s8, 3  ;;  %v259_v1 = vld [vmem:[%s245_s27] sm:$0xf]  ;;  %s239_s8 = sand.u32 1, %s708_s20  }
  0x38   : > { %s453_s18 = sshll.u32 %s253_s6, 2  ;;  %v472_v2 = vld [vmem:[%s250_s9] sm:$0xff]  ;;  %s449_s6 = sshll.u32 %s239_s8, 2 }
  0x39   : > { %s256_s12 = scalar_lea.vmem %s209_s22, %s453_s18 [#allocation5]  ;;  %304 = vmatpush.bf16.msra.mxu1 %v472_v2  ;;  %s324_s22 = sadd.s32 %s732_s25, %s465_s29 }
  0x3a   : > { %v471_v0 = vld [vmem:[%s256_s12] sm:$0xff]  ;;  %s466_s5 = sshll.u32 %s324_s22, 2  ;;  %s241_s13 = scalar_lea.vmem [#allocation8], %s449_s6 }
  0x3b   : > { %277 = vmatpush.bf16.msra.mxu0 %v471_v0  ;;  %s326_s26 = scalar_lea.hbm %s956_s4, %s466_s5  ;;  %s328_s7 = sshll.u32 %s241_s13, 4  ;;  %s329_s7 = int_to_ptr.vmem [resolvable:$true] %s328_s7 }
  0x3c   : > { %s330_s27 = sshll.u32 %s326_s26, 4  ;;  %s314_s11 = scalar_lea.sflag [#allocation7], %s239_s8  ;;  %s331_s27 = int_to_ptr.hbm [resolvable:$true] %s330_s27 }
  0x3d   : > { %s634_s24 = sshra.s32 %s331_s27, 4  ;;  %s640_s9 = scalar_lea.hbm %s956_s4, 128  ;;  %s635_s24 = int_to_ptr.hbm [resolvable:$true] %s634_s24 }
  0x3e   : > { %458 = vmatmul.msk.bf16.vlgmr.msra.gmra.mxu0 %vm266_vm0, %v259_v1  ;;  %s636_s25 = scalar_lea.hbm %s635_s24, 4  ;;  %p641_p11 = scmp.lt.s32.totalorder %s635_s24, %s956_s4 }
  0x3f   : > { %p637_p7 = scmp.ne.s32.totalorder %s635_s24, %s636_s25  ;;  %p642_p13 = scmp.lt.s32.totalorder %s640_s9, %s636_s25 }
  0x41   : > { %p638_p9 = pnand %p637_p7, %p859_p12  ;;  %p643_p0 = por %p642_p13, %p641_p11 }
  0x43   : > { %p639_p10 = pneg %p638_p9 }
  0x45   : > { %p644_p1 = pnand %p643_p0, %p639_p10 }
  0xbb   : > { %v279_v3 = vpop.f32.mrf.mxu0 }
  0xbc   : > { %283 = vst.msk [vmem:[#allocation2] sm:$0xff] %vm266_vm0, %v279_v3 }
  0xc3   : > { %v281_v4 = vpop.f32.mrf.mxu0  ;;  %v284_v5 = vld [vmem:[#allocation2] sm:$0xff] }
  0xc4   : > { %v285_v6 = vpack.c.bf16 %v284_v5, %v284_v5 }
  0xc6   : > { %463 = vmatmul.msk.bf16.vlgmr.msra.gmra.mxu1 %vm266_vm0, %v285_v6 }
 0x143   : > { %v306_v7 = vpop.f32.mrf.mxu1 }
 0x144   : > { %v310_v8 = vpack.c.bf16 %v306_v7, %v306_v7 }
 0x146   : > { %312 = vst.msk [vmem:[%s241_s13] sm:$0xf] %vm311_vm1, %v310_v8 }
 0x147   : > { %647 = shalt.err (!%p644_p1)
}
 0x148   : > { %475 = dma.vmem_to_hbm [thread:$0]  (%p859_p12), %s329_s7, 64, %s331_s27, %s314_s11  }
 0x14b   : > { %v308_v9 = vpop.f32.mrf.mxu1 }
 0x14c PF: > { %p486_p4 = scmp.ge.s32.totalorder %s744_s28, 2  ;;  %s342_s8 = sand.u32 1, %s704_s19  }
 0x14d   : > { %s343_s5 = scalar_lea.sflag [#allocation7], %s342_s8 }
 0x14e   : > { %p482_p5 = pnand %p486_p4, %p872_p2 }
 0x150   : > { %p483_p6 = pneg %p482_p5 }
 0x152   : > { %699 = dma.done.wait (%p483_p6), %s343_s5, 64  }
 0x153   : > { %701 = vsyncadd (%p483_p6), %s343_s5, 4294967232  ;;  %s28_s28 = sadd.s32 1, %s744_s28   ;;  %s969_s24 = sld [smem:[#allocation12_spill]] }
 0x154   : > { %p25_p8 = scmp.ge.s32.totalorder %s28_s28, 34   ;;  %s970_s25 = sld [smem:[#allocation13_spill]] }
 0x155   : > { %s971_s26 = sld [smem:[#allocation14_spill]]  ;;  %s973_s19 = smov %s708_s20 }
 0x156   : > { %s972_s27 = sld [smem:[#allocation15_spill]]  ;;  %s974_s20 = smov %s712_s21 }
 0x157   : > { %s975_s21 = smov %s867_s16  ;;  %s976_s22 = smov %s720_s23 }
 0x158   : > { %s977_s23 = smov %s724_s0  ;;  %s978_s0 = smov %s864_s15 }
 0x159   :  { %27 = sbr.rel (!%p25_p8) target bundleno = 15 (0xf), region = 84 }
 0x15e   :  { %349 = vsyncpa [#allocation6], 1 }
 0x15f   :  { %351 = vsyncpa [#allocation6 + $0x1], 1 }
 0x160   :  { %352 = vsyncpa [#allocation7], 1 }
 0x161   :  { %354 = vsyncpa [#allocation7 + $0x1], 1 }

</bundles_post_ra>
